<compile_context>
chip_gen: v6e
topology: v6e:2x2x1
jax: 0.10.0
libtpu: 0.0.40
codegen_flags: <defaults>
</compile_context>

<pallas_src>
import functools

import jax
import jax.numpy as jnp
from jax.experimental import pallas as pl
from jax.experimental.pallas import tpu as pltpu


def head_kernel(x_ref, w1_ref, b1_ref, w2_ref, b2_ref, o_ref):
    # x: (TB, 3H) in VMEM; BN already folded into w/b.
    x = x_ref[...]
    # Linear(3H -> 512) + bias + ReLU  (MXU matmul, f32 accumulation)
    h = jnp.dot(x, w1_ref[...], preferred_element_type=jnp.float32) + b1_ref[...]
    h = jnp.maximum(h, 0.0)
    # Linear(512 -> 128 padded) + bias; lane-dense store.
    o_ref[...] = (jnp.dot(h, w2_ref[...], preferred_element_type=jnp.float32)
                  + b2_ref[...])


def _fold_bn(gamma, beta, mean, var, eps=1e-5):
    """Fold BatchNorm (eval mode) into per-feature scale/shift vectors."""
    inv = gamma / jnp.sqrt(var + eps)
    scale = inv
    shift = beta - mean * inv
    return scale, shift                       # each (F,)


def init_head_params(key, bert_hidden_size):
    """Deterministic init matching the PyTorch __init__."""
    f_in = bert_hidden_size * 3
    k1, k2 = jax.random.split(key)

    # BatchNorm1d(3H): weight=1, bias=0, running_mean=0, running_var=1
    bn1 = dict(gamma=jnp.ones((f_in,), jnp.float32),
               beta=jnp.zeros((f_in,), jnp.float32),
               mean=jnp.zeros((f_in,), jnp.float32),
               var=jnp.ones((f_in,), jnp.float32))
    # Linear(3H, 512): kaiming_normal_ (fan_in, gain=sqrt(2)), bias=0.
    # Stored as (in_features, out_features).
    w1 = jax.random.normal(k1, (f_in, 512), jnp.float32) * jnp.sqrt(2.0 / f_in)
    b1 = jnp.zeros((512,), jnp.float32)
    # BatchNorm1d(512)
    bn2 = dict(gamma=jnp.ones((512,), jnp.float32),
               beta=jnp.zeros((512,), jnp.float32),
               mean=jnp.zeros((512,), jnp.float32),
               var=jnp.ones((512,), jnp.float32))
    # Linear(512, 3): kaiming_normal_, bias=0
    w2 = jax.random.normal(k2, (512, 3), jnp.float32) * jnp.sqrt(2.0 / 512.0)
    b2 = jnp.zeros((3,), jnp.float32)
    return dict(bn1=bn1, w1=w1, b1=b1, bn2=bn2, w2=w2, b2=b2)


OUT_PAD = 128   # lane-dense output width (true outputs are columns 0..2)


@jax.jit
def head_forward(bert_outputs, offsets, params):
    # bert_outputs: (B, S, H) f32 ; offsets: (B, 3) int32
    B, S, H = bert_outputs.shape
    F_in = 3 * H
    assert F_in == params["w1"].shape[0]

    # --- Glue: gather 3 token embeddings per example, flatten to (B, 3H). ---
    x = jnp.take_along_axis(bert_outputs, offsets[:, :, None], axis=1)
    x = x.reshape(B, F_in).astype(jnp.float32)

    # --- Fold BatchNorms into the Linear weights/biases (exact, eval mode). ---
    s1, sh1 = _fold_bn(**params["bn1"])
    s2, sh2 = _fold_bn(**params["bn2"])
    w1 = s1[:, None] * params["w1"]                       # (3H, 512)
    b1 = (sh1 @ params["w1"] + params["b1"])[None, :]     # (1, 512)
    w2 = s2[:, None] * params["w2"]                       # (512, 3)
    b2 = (sh2 @ params["w2"] + params["b2"])[None, :]     # (1, 3)

    # --- Pad final Linear to 128 lanes so the output store is lane-dense. ---
    w2p = jnp.zeros((512, OUT_PAD), jnp.float32).at[:, :3].set(w2)
    b2p = jnp.zeros((1, OUT_PAD), jnp.float32).at[:, :3].set(b2)

    # --- Batch tiling: TB multiple of 8; pad B up to a multiple of TB. ---
    if B > 128:
        TB = 128
    else:
        TB = max(8, ((B + 7) // 8) * 8)
    Bp = ((B + TB - 1) // TB) * TB
    if Bp != B:
        x = jnp.pad(x, ((0, Bp - B), (0, 0)))
    grid = (Bp // TB,)

    out = pl.pallas_call(
        head_kernel,
        out_shape=jax.ShapeDtypeStruct((Bp, OUT_PAD), jnp.float32),
        grid_spec=pltpu.PrefetchScalarGridSpec(
            num_scalar_prefetch=0,
            grid=grid,
            in_specs=[
                pl.BlockSpec((TB, F_in), lambda i: (i, 0)),     # x tile
                pl.BlockSpec((F_in, 512), lambda i: (0, 0)),    # w1 (resident)
                pl.BlockSpec((1, 512), lambda i: (0, 0)),       # b1 (resident)
                pl.BlockSpec((512, OUT_PAD), lambda i: (0, 0)), # w2 (resident)
                pl.BlockSpec((1, OUT_PAD), lambda i: (0, 0)),   # b2 (resident)
            ],
            out_specs=pl.BlockSpec((TB, OUT_PAD), lambda i: (i, 0)),
        ),
        compiler_params=pltpu.CompilerParams(
            dimension_semantics=("parallel",)),
    )(x, w1, b1, w2p, b2p)

    # Drop batch padding and the zero-padded output lanes.
    return out[:B, :3]


def head_reference(bert_outputs, offsets, params):
    """Pure-JAX reference (unfused BN path) for correctness checking."""
    B, S, H = bert_outputs.shape
    x = jnp.take_along_axis(bert_outputs, offsets[:, :, None], axis=1)
    x = x.reshape(B, 3 * H)
    s1, sh1 = _fold_bn(**params["bn1"])
    s2, sh2 = _fold_bn(**params["bn2"])
    h = x * s1[None, :] + sh1[None, :]
    h = jnp.maximum(h @ params["w1"] + params["b1"][None, :], 0.0)
    h = h * s2[None, :] + sh2[None, :]
    return h @ params["w2"] + params["b2"][None, :]


if __name__ == "__main__":
    key = jax.random.PRNGKey(0)
    k_param, k_x, k_off = jax.random.split(key, 3)

    B, S, H = 8, 16, 32          # batch, seq, bert_hidden_size
    params = init_head_params(k_param, H)

    bert_outputs = jax.random.normal(k_x, (B, S, H), jnp.float32)
    offsets = jax.random.randint(k_off, (B, 3), 0, S, jnp.int32)

    out = head_forward(bert_outputs, offsets, params)
    out = jax.block_until_ready(out)

    ref = head_reference(bert_outputs, offsets, params)
    assert out.shape == (B, 3)
    assert jnp.allclose(out, ref, atol=1e-4, rtol=1e-4), "mismatch vs reference"

    print("KERNEL_OK")
</pallas_src>

<mosaic_0001>
module attributes {stable_mosaic.version = 11 : i64} {
  func.func @head_kernel(%arg0: i32, %arg1: memref<8x96xf32, #tpu.memory_space<vmem>>, %arg2: memref<96x512xf32, #tpu.memory_space<vmem>>, %arg3: memref<1x512xf32, #tpu.memory_space<vmem>>, %arg4: memref<512x128xf32, #tpu.memory_space<vmem>>, %arg5: memref<1x128xf32, #tpu.memory_space<vmem>>, %arg6: memref<8x128xf32, #tpu.memory_space<vmem>>) attributes {dimension_semantics = [#tpu.dimension_semantics<parallel>], iteration_bounds = array<i64: 1>, scalar_prefetch = 0 : i64, scratch_operands = 0 : i64, tpu.core_type = #tpu.core_type<tc>, window_params = [{transform_indices = @transform_0, window_bounds = array<i64: 8, 96>}, {pipeline_mode = #tpu.pipeline_mode<synchronous>, transform_indices = @transform_1, window_bounds = array<i64: 96, 512>}, {pipeline_mode = #tpu.pipeline_mode<synchronous>, transform_indices = @transform_2, window_bounds = array<i64: 1, 512>}, {pipeline_mode = #tpu.pipeline_mode<synchronous>, transform_indices = @transform_3, window_bounds = array<i64: 512, 128>}, {pipeline_mode = #tpu.pipeline_mode<synchronous>, transform_indices = @transform_4, window_bounds = array<i64: 1, 128>}, {transform_indices = @transform_5, window_bounds = array<i64: 8, 128>}]} {
    %c0 = arith.constant 0 : index
    %c0_0 = arith.constant 0 : index
    %0 = vector.load %arg1[%c0, %c0_0] : memref<8x96xf32, #tpu.memory_space<vmem>>, vector<8x96xf32>
    %c0_1 = arith.constant 0 : index
    %c0_2 = arith.constant 0 : index
    %1 = vector.load %arg2[%c0_1, %c0_2] : memref<96x512xf32, #tpu.memory_space<vmem>>, vector<96x512xf32>
    %cst = arith.constant dense<0.000000e+00> : vector<8x512xf32>
    %2 = tpu.matmul %0, %1, %cst {dimension_numbers = #tpu.dot_dimension_numbers<[1], [0], [0], [1], [0, 0, 1, 1], [], []>} : vector<8x96xf32>, vector<96x512xf32>, vector<8x512xf32> -> vector<8x512xf32>
    %c0_3 = arith.constant 0 : index
    %c0_4 = arith.constant 0 : index
    %3 = vector.load %arg3[%c0_3, %c0_4] : memref<1x512xf32, #tpu.memory_space<vmem>>, vector<1x512xf32>
    %4 = vector.broadcast %3 : vector<1x512xf32> to vector<8x512xf32>
    %5 = arith.addf %2, %4 : vector<8x512xf32>
    %cst_5 = arith.constant 0.000000e+00 : f32
    %6 = vector.broadcast %cst_5 : f32 to vector<8x512xf32>
    %7 = arith.maximumf %5, %6 : vector<8x512xf32>
    %c0_6 = arith.constant 0 : index
    %c0_7 = arith.constant 0 : index
    %8 = vector.load %arg4[%c0_6, %c0_7] : memref<512x128xf32, #tpu.memory_space<vmem>>, vector<512x128xf32>
    %cst_8 = arith.constant dense<0.000000e+00> : vector<8x128xf32>
    %9 = tpu.matmul %7, %8, %cst_8 {dimension_numbers = #tpu.dot_dimension_numbers<[1], [0], [0], [1], [0, 0, 1, 1], [], []>} : vector<8x512xf32>, vector<512x128xf32>, vector<8x128xf32> -> vector<8x128xf32>
    %c0_9 = arith.constant 0 : index
    %c0_10 = arith.constant 0 : index
    %10 = vector.load %arg5[%c0_9, %c0_10] : memref<1x128xf32, #tpu.memory_space<vmem>>, vector<1x128xf32>
    %11 = vector.broadcast %10 : vector<1x128xf32> to vector<8x128xf32>
    %12 = arith.addf %9, %11 : vector<8x128xf32>
    %c0_11 = arith.constant 0 : index
    %c0_12 = arith.constant 0 : index
    %13 = vector.load %arg6[%c0_11, %c0_12] : memref<8x128xf32, #tpu.memory_space<vmem>>, vector<8x128xf32>
    tpu.vector_store %arg6[%c0_11, %c0_12], %12 {strides = array<i32>} : memref<8x128xf32, #tpu.memory_space<vmem>>, vector<8x128xf32>,
    return
  }
  func.func @transform_0(%arg0: i32) -> (i32, i32) {
    %c0_i32 = arith.constant 0 : i32
    %c0_i32_0 = arith.constant 0 : i32
    return %arg0, %c0_i32 : i32, i32
  }
  func.func @transform_1(%arg0: i32) -> (i32, i32) {
    %c0_i32 = arith.constant 0 : i32
    %c0_i32_0 = arith.constant 0 : i32
    %c0_i32_1 = arith.constant 0 : i32
    return %c0_i32, %c0_i32_0 : i32, i32
  }
  func.func @transform_2(%arg0: i32) -> (i32, i32) {
    %c0_i32 = arith.constant 0 : i32
    %c0_i32_0 = arith.constant 0 : i32
    %c0_i32_1 = arith.constant 0 : i32
    return %c0_i32, %c0_i32_0 : i32, i32
  }
  func.func @transform_3(%arg0: i32) -> (i32, i32) {
    %c0_i32 = arith.constant 0 : i32
    %c0_i32_0 = arith.constant 0 : i32
    %c0_i32_1 = arith.constant 0 : i32
    return %c0_i32, %c0_i32_0 : i32, i32
  }
  func.func @transform_4(%arg0: i32) -> (i32, i32) {
    %c0_i32 = arith.constant 0 : i32
    %c0_i32_0 = arith.constant 0 : i32
    %c0_i32_1 = arith.constant 0 : i32
    return %c0_i32, %c0_i32_0 : i32, i32
  }
  func.func @transform_5(%arg0: i32) -> (i32, i32) {
    %c0_i32 = arith.constant 0 : i32
    %c0_i32_0 = arith.constant 0 : i32
    return %arg0, %c0_i32 : i32, i32
  }
}

</mosaic_0001>

<bundles_post_ra>
// kernel: head_forward.1
= control target key start
LH: loop header
LB: loop body
LE: loop exit
PB: predicated region body
PF: predicated region fallthrough
CT: control target
= control target key end

     0   :  { %v531_v3 = vmov 0.0   ;;  %vm91_vm0 = vcmask 785408   ;;  %s910_s1 = inlined_call_operand.vmem [shape: f32[96,512], index: 1, kind: input, shape index: {}]   ;;  %s911_s0 = inlined_call_operand.vmem [shape: f32[8,96], index: 0, kind: input, shape index: {}]   ;;  %s912_s3 = inlined_call_operand.vmem [shape: f32[512,128], index: 3, kind: input, shape index: {}]   ;;  %s913_s2 = inlined_call_operand.vmem [shape: f32[1,512], index: 2, kind: input, shape index: {}]   ;;  %s914_s4 = inlined_call_operand.vmem [shape: f32[1,128], index: 4, kind: input, shape index: {}]   ;;  %s915_s5 = inlined_call_operand.vmem [shape: f32[8,128], index: 5, kind: output, shape index: {}]  }
   0x1   :  { %v66_v0 = vld [vmem:[%s910_s1 + $0x168] sm:$0xff]  ;;  %v68_v1 = vld [vmem:[%s910_s1 + $0x178] sm:$0xff]  ;;  %v65_v2 = vld [vmem:[%s910_s1 + $0x160] sm:$0xff]  ;;  %159 = vmatprep.mubr.f32.mxu0 %v531_v3  ;;  %230 = vmatprep.mubr.f32.mxu1 %v531_v3 }
   0x2   :  { %103 = vmatprep.subr.mxu0 %v66_v0  ;;  %174 = vmatprep.subr.mxu1 %v68_v1  ;;  %v67_v4 = vld [vmem:[%s910_s1 + $0x170] sm:$0xff]  ;;  %v62_v5 = vld [vmem:[%s910_s1 + $0x148] sm:$0xff]  ;;  %v64_v6 = vld [vmem:[%s910_s1 + $0x158] sm:$0xff] }
   0x3   :  { %104 = vmatpush1.msra.mxu0 %v65_v2  ;;  %175 = vmatpush1.msra.mxu1 %v67_v4  ;;  %v61_v7 = vld [vmem:[%s910_s1 + $0x140] sm:$0xff]  ;;  %v63_v8 = vld [vmem:[%s910_s1 + $0x150] sm:$0xff]  ;;  %v58_v9 = vld [vmem:[%s910_s1 + $0x128] sm:$0xff] }
   0x4   :  { %105 = vmatprep.subr.mxu0 %v62_v5  ;;  %176 = vmatprep.subr.mxu1 %v64_v6  ;;  %v60_v10 = vld [vmem:[%s910_s1 + $0x138] sm:$0xff]  ;;  %v57_v11 = vld [vmem:[%s910_s1 + $0x120] sm:$0xff]  ;;  %v59_v12 = vld [vmem:[%s910_s1 + $0x130] sm:$0xff] }
   0x5   :  { %106 = vmatpush1.msra.mxu0 %v61_v7  ;;  %177 = vmatpush1.msra.mxu1 %v63_v8  ;;  %v54_v13 = vld [vmem:[%s910_s1 + $0x108] sm:$0xff]  ;;  %v56_v14 = vld [vmem:[%s910_s1 + $0x118] sm:$0xff]  ;;  %v53_v15 = vld [vmem:[%s910_s1 + $0x100] sm:$0xff] }
   0x6   :  { %107 = vmatprep.subr.mxu0 %v58_v9  ;;  %178 = vmatprep.subr.mxu1 %v60_v10  ;;  %v55_v16 = vld [vmem:[%s910_s1 + $0x110] sm:$0xff]  ;;  %v50_v17 = vld [vmem:[%s910_s1 + $0xe8] sm:$0xff]  ;;  %v52_v18 = vld [vmem:[%s910_s1 + $0xf8] sm:$0xff] }
   0x7   :  { %108 = vmatpush1.msra.mxu0 %v57_v11  ;;  %179 = vmatpush1.msra.mxu1 %v59_v12  ;;  %v49_v19 = vld [vmem:[%s910_s1 + $0xe0] sm:$0xff]  ;;  %v51_v20 = vld [vmem:[%s910_s1 + $0xf0] sm:$0xff]  ;;  %v46_v21 = vld [vmem:[%s910_s1 + $0xc8] sm:$0xff] }
   0x8   :  { %109 = vmatprep.subr.mxu0 %v54_v13  ;;  %180 = vmatprep.subr.mxu1 %v56_v14  ;;  %v48_v22 = vld [vmem:[%s910_s1 + $0xd8] sm:$0xff]  ;;  %v45_v23 = vld [vmem:[%s910_s1 + $0xc0] sm:$0xff]  ;;  %v47_v24 = vld [vmem:[%s910_s1 + $0xd0] sm:$0xff] }
   0x9   :  { %110 = vmatpush1.msra.mxu0 %v53_v15  ;;  %181 = vmatpush1.msra.mxu1 %v55_v16  ;;  %v42_v25 = vld [vmem:[%s910_s1 + $0xa8] sm:$0xff]  ;;  %v44_v26 = vld [vmem:[%s910_s1 + $0xb8] sm:$0xff]  ;;  %v41_v27 = vld [vmem:[%s910_s1 + $0xa0] sm:$0xff] }
   0xa   :  { %111 = vmatprep.subr.mxu0 %v50_v17  ;;  %182 = vmatprep.subr.mxu1 %v52_v18  ;;  %v43_v28 = vld [vmem:[%s910_s1 + $0xb0] sm:$0xff]  ;;  %v38_v29 = vld [vmem:[%s910_s1 + $0x88] sm:$0xff]  ;;  %v40_v30 = vld [vmem:[%s910_s1 + $0x98] sm:$0xff] }
   0xb   :  { %112 = vmatpush1.msra.mxu0 %v49_v19  ;;  %183 = vmatpush1.msra.mxu1 %v51_v20  ;;  %v37_v31 = vld [vmem:[%s910_s1 + $0x80] sm:$0xff]  ;;  %v39_v32 = vld [vmem:[%s910_s1 + $0x90] sm:$0xff]  ;;  %v34_v33 = vld [vmem:[%s910_s1 + $0x68] sm:$0xff] }
   0xc   :  { %113 = vmatprep.subr.mxu0 %v46_v21  ;;  %184 = vmatprep.subr.mxu1 %v48_v22  ;;  %v36_v34 = vld [vmem:[%s910_s1 + $0x78] sm:$0xff]  ;;  %v33_v35 = vld [vmem:[%s910_s1 + $0x60] sm:$0xff]  ;;  %v35_v36 = vld [vmem:[%s910_s1 + $0x70] sm:$0xff] }
   0xd   :  { %114 = vmatpush1.msra.mxu0 %v45_v23  ;;  %185 = vmatpush1.msra.mxu1 %v47_v24  ;;  %v30_v37 = vld [vmem:[%s910_s1 + $0x48] sm:$0xff]  ;;  %v32_v38 = vld [vmem:[%s910_s1 + $0x58] sm:$0xff]  ;;  %v29_v39 = vld [vmem:[%s910_s1 + $0x40] sm:$0xff] }
   0xe   :  { %115 = vmatprep.subr.mxu0 %v42_v25  ;;  %186 = vmatprep.subr.mxu1 %v44_v26  ;;  %v31_v40 = vld [vmem:[%s910_s1 + $0x50] sm:$0xff]  ;;  %v26_v41 = vld [vmem:[%s910_s1 + $0x28] sm:$0xff]  ;;  %v28_v42 = vld [vmem:[%s910_s1 + $0x38] sm:$0xff] }
   0xf   :  { %116 = vmatpush1.msra.mxu0 %v41_v27  ;;  %187 = vmatpush1.msra.mxu1 %v43_v28  ;;  %v25_v43 = vld [vmem:[%s910_s1 + $0x20] sm:$0xff]  ;;  %v27_v44 = vld [vmem:[%s910_s1 + $0x30] sm:$0xff]  ;;  %v22_v45 = vld [vmem:[%s910_s1 + $0x8] sm:$0xff] }
  0x10   :  { %117 = vmatprep.subr.mxu0 %v38_v29  ;;  %188 = vmatprep.subr.mxu1 %v40_v30  ;;  %v24_v46 = vld [vmem:[%s910_s1 + $0x18] sm:$0xff]  ;;  %v21_v47 = vld [vmem:[%s910_s1] sm:$0xff]  ;;  %v23_v48 = vld [vmem:[%s910_s1 + $0x10] sm:$0xff] }
  0x11   :  { %118 = vmatpush1.msra.mxu0 %v37_v31  ;;  %189 = vmatpush1.msra.mxu1 %v39_v32  ;;  %v20_v49 = vld [vmem:[%s911_s0] sm:$0xff]  ;;  %v272_v50 = vld [vmem:[%s912_s3 + $0xf8] sm:$0xff]  ;;  %v271_v54 = vld [vmem:[%s912_s3 + $0xf0] sm:$0xff] }
  0x12   :  { %119 = vmatprep.subr.mxu0 %v34_v33  ;;  %190 = vmatprep.subr.mxu1 %v36_v34  ;;  %v304_v51 = vld [vmem:[%s912_s3 + $0x1f8] sm:$0xff]  ;;  %v303_v55 = vld [vmem:[%s912_s3 + $0x1f0] sm:$0xff]  ;;  %v270_v58 = vld [vmem:[%s912_s3 + $0xe8] sm:$0xff] }
  0x13   :  { %120 = vmatpush1.msra.mxu0 %v33_v35  ;;  %191 = vmatpush1.msra.mxu1 %v35_v36  ;;  %v256_v52 = vld [vmem:[%s912_s3 + $0x78] sm:$0xff]  ;;  %v255_v56 = vld [vmem:[%s912_s3 + $0x70] sm:$0xff]  ;;  %v302_v59 = vld [vmem:[%s912_s3 + $0x1e8] sm:$0xff] }
  0x14   :  { %121 = vmatprep.subr.mxu0 %v30_v37  ;;  %192 = vmatprep.subr.mxu1 %v32_v38  ;;  %v288_v53 = vld [vmem:[%s912_s3 + $0x178] sm:$0xff]  ;;  %v287_v57 = vld [vmem:[%s912_s3 + $0x170] sm:$0xff]  ;;  %v254_v60 = vld [vmem:[%s912_s3 + $0x68] sm:$0xff] }
  0x15   :  { %122 = vmatpush1.msra.mxu0 %v29_v39  ;;  %193 = vmatpush1.msra.mxu1 %v31_v40  ;;  %v286_v61 = vld [vmem:[%s912_s3 + $0x168] sm:$0xff]  ;;  %v269_v62 = vld [vmem:[%s912_s3 + $0xe0] sm:$0xff]  ;;  %v268_v2 = vld [vmem:[%s912_s3 + $0xd8] sm:$0xff] }
  0x16   :  { %123 = vmatprep.subr.mxu0 %v26_v41  ;;  %194 = vmatprep.subr.mxu1 %v28_v42  ;;  %v301_v63 = vld [vmem:[%s912_s3 + $0x1e0] sm:$0xff]  ;;  %v300_v3 = vld [vmem:[%s912_s3 + $0x1d8] sm:$0xff]  ;;  %v267_v6 = vld [vmem:[%s912_s3 + $0xd0] sm:$0xff] }
  0x17   :  { %124 = vmatpush1.msra.mxu0 %v25_v43  ;;  %195 = vmatpush1.msra.mxu1 %v27_v44  ;;  %v253_v0 = vld [vmem:[%s912_s3 + $0x60] sm:$0xff]  ;;  %v252_v4 = vld [vmem:[%s912_s3 + $0x58] sm:$0xff]  ;;  %v299_v7 = vld [vmem:[%s912_s3 + $0x1d0] sm:$0xff] }
  0x18   :  { %125 = vmatprep.subr.mxu0 %v22_v45  ;;  %196 = vmatprep.subr.mxu1 %v24_v46  ;;  %v285_v1 = vld [vmem:[%s912_s3 + $0x160] sm:$0xff]  ;;  %v284_v5 = vld [vmem:[%s912_s3 + $0x158] sm:$0xff]  ;;  %v251_v8 = vld [vmem:[%s912_s3 + $0x50] sm:$0xff] }
  0x19   :  { %126 = vmatpush1.msra.mxu0 %v21_v47  ;;  %197 = vmatpush1.msra.mxu1 %v23_v48  ;;  %v283_v9 = vld [vmem:[%s912_s3 + $0x150] sm:$0xff]  ;;  %v266_v10 = vld [vmem:[%s912_s3 + $0xc8] sm:$0xff]  ;;  %v265_v14 = vld [vmem:[%s912_s3 + $0xc0] sm:$0xff] }
  0x1a   :  { %457 = vmatmul.mubr.msk.f32.vlgmr.msra.gmra.mxu0 %vm91_vm0, %v20_v49  ;;  %458 = vmatmul.mubr.msk.f32.vlgmr.msra.gmra.mxu1 %vm91_vm0, %v20_v49  ;;  %v298_v11 = vld [vmem:[%s912_s3 + $0x1c8] sm:$0xff]  ;;  %v297_v15 = vld [vmem:[%s912_s3 + $0x1c0] sm:$0xff]  ;;  %v264_v18 = vld [vmem:[%s912_s3 + $0xb8] sm:$0xff] }
  0x1b   :  { %460 = vmatprep.subr.mxu0 %v272_v50  ;;  %495 = vmatprep.subr.mxu1 %v304_v51  ;;  %v250_v12 = vld [vmem:[%s912_s3 + $0x48] sm:$0xff]  ;;  %v249_v16 = vld [vmem:[%s912_s3 + $0x40] sm:$0xff]  ;;  %v296_v19 = vld [vmem:[%s912_s3 + $0x1b8] sm:$0xff]  ;;  %v71_v50 = vlaneseq }
  0x1c   :  { %461 = vmatpush3.msra.mxu0 %v256_v52  ;;  %496 = vmatpush3.msra.mxu1 %v288_v53  ;;  %v282_v13 = vld [vmem:[%s912_s3 + $0x148] sm:$0xff]  ;;  %v281_v17 = vld [vmem:[%s912_s3 + $0x140] sm:$0xff]  ;;  %v248_v20 = vld [vmem:[%s912_s3 + $0x38] sm:$0xff] }
  0x1d   :  { %462 = vmatprep.subr.mxu0 %v271_v54  ;;  %497 = vmatprep.subr.mxu1 %v303_v55  ;;  %v280_v21 = vld [vmem:[%s912_s3 + $0x138] sm:$0xff]  ;;  %v263_v22 = vld [vmem:[%s912_s3 + $0xb0] sm:$0xff]  ;;  %v262_v26 = vld [vmem:[%s912_s3 + $0xa8] sm:$0xff]  ;;  %v72_v51 = vshrl.u32 %v71_v50, 7 }
  0x1e   :  { %463 = vmatpush3.msra.mxu0 %v255_v56  ;;  %498 = vmatpush3.msra.mxu1 %v287_v57  ;;  %v295_v23 = vld [vmem:[%s912_s3 + $0x1b0] sm:$0xff]  ;;  %v294_v27 = vld [vmem:[%s912_s3 + $0x1a8] sm:$0xff]  ;;  %v261_v30 = vld [vmem:[%s912_s3 + $0xa0] sm:$0xff] }
  0x1f   :  { %464 = vmatprep.subr.mxu0 %v270_v58  ;;  %499 = vmatprep.subr.mxu1 %v302_v59  ;;  %v247_v24 = vld [vmem:[%s912_s3 + $0x30] sm:$0xff]  ;;  %v246_v28 = vld [vmem:[%s912_s3 + $0x28] sm:$0xff]  ;;  %v293_v31 = vld [vmem:[%s912_s3 + $0x1a0] sm:$0xff]  ;;  %v81_v52 = vsub.s32 2, %v72_v51  ;;  %v73_v53 = vsub.s32 0, %v72_v51  ;;  %v77_v55 = vsub.s32 1, %v72_v51 }
  0x20   :  { %465 = vmatpush3.msra.mxu0 %v254_v60  ;;  %500 = vmatpush3.msra.mxu1 %v286_v61  ;;  %v279_v25 = vld [vmem:[%s912_s3 + $0x130] sm:$0xff]  ;;  %v278_v29 = vld [vmem:[%s912_s3 + $0x128] sm:$0xff]  ;;  %v245_v32 = vld [vmem:[%s912_s3 + $0x20] sm:$0xff]  ;;  %v85_v56 = vsub.s32 3, %v72_v51 }
  0x21   :  { %466 = vmatprep.subr.mxu0 %v269_v62  ;;  %501 = vmatprep.subr.mxu1 %v301_v63  ;;  %v277_v33 = vld [vmem:[%s912_s3 + $0x120] sm:$0xff]  ;;  %v260_v34 = vld [vmem:[%s912_s3 + $0x98] sm:$0xff]  ;;  %v259_v38 = vld [vmem:[%s912_s3 + $0x90] sm:$0xff] }
  0x22   :  { %467 = vmatpush3.msra.mxu0 %v253_v0  ;;  %502 = vmatpush3.msra.mxu1 %v285_v1  ;;  %v292_v35 = vld [vmem:[%s912_s3 + $0x198] sm:$0xff]  ;;  %v291_v39 = vld [vmem:[%s912_s3 + $0x190] sm:$0xff]  ;;  %v258_v42 = vld [vmem:[%s912_s3 + $0x88] sm:$0xff] }
  0x23   :  { %468 = vmatprep.subr.mxu0 %v268_v2  ;;  %503 = vmatprep.subr.mxu1 %v300_v3  ;;  %v244_v36 = vld [vmem:[%s912_s3 + $0x18] sm:$0xff]  ;;  %v243_v40 = vld [vmem:[%s912_s3 + $0x10] sm:$0xff]  ;;  %v290_v43 = vld [vmem:[%s912_s3 + $0x188] sm:$0xff] }
  0x24   :  { %469 = vmatpush3.msra.mxu0 %v252_v4  ;;  %504 = vmatpush3.msra.mxu1 %v284_v5  ;;  %v276_v37 = vld [vmem:[%s912_s3 + $0x118] sm:$0xff]  ;;  %v275_v41 = vld [vmem:[%s912_s3 + $0x110] sm:$0xff]  ;;  %v242_v44 = vld [vmem:[%s912_s3 + $0x8] sm:$0xff] }
  0x25   :  { %470 = vmatprep.subr.mxu0 %v267_v6  ;;  %505 = vmatprep.subr.mxu1 %v299_v7  ;;  %v274_v45 = vld [vmem:[%s912_s3 + $0x108] sm:$0xff]  ;;  %v257_v46 = vld [vmem:[%s912_s3 + $0x80] sm:$0xff] }
  0x26   :  { %471 = vmatpush3.msra.mxu0 %v251_v8  ;;  %506 = vmatpush3.msra.mxu1 %v283_v9  ;;  %v289_v47 = vld [vmem:[%s912_s3 + $0x180] sm:$0xff] }
  0x27   :  { %472 = vmatprep.subr.mxu0 %v266_v10  ;;  %507 = vmatprep.subr.mxu1 %v298_v11  ;;  %v241_v48 = vld [vmem:[%s912_s3] sm:$0xff] }
  0x28   :  { %473 = vmatpush3.msra.mxu0 %v250_v12  ;;  %508 = vmatpush3.msra.mxu1 %v282_v13  ;;  %v273_v49 = vld [vmem:[%s912_s3 + $0x100] sm:$0xff] }
  0x29   :  { %474 = vmatprep.subr.mxu0 %v265_v14  ;;  %509 = vmatprep.subr.mxu1 %v297_v15  ;;  %v69_v54 = vld [vmem:[%s913_s2] sm:$0xf] }
  0x2a   :  { %475 = vmatpush3.msra.mxu0 %v249_v16  ;;  %510 = vmatpush3.msra.mxu1 %v281_v17  ;;  %v82_v57 = vrot.slane %v69_v54, %v81_v52  ;;  %v74_v58 = vrot.slane %v69_v54, %v73_v53  ;;  %v78_v59 = vrot.slane %v69_v54, %v77_v55  ;;  %v459_v11 = vld [vmem:[%s914_s4] ss:$0 sm:$0xff] }
  0x2b   :  { %476 = vmatprep.subr.mxu0 %v264_v18  ;;  %511 = vmatprep.subr.mxu1 %v296_v19  ;;  %v86_v60 = vrot.slane %v69_v54, %v85_v56 }
  0x2c   :  { %477 = vmatpush3.msra.mxu0 %v248_v20  ;;  %512 = vmatpush3.msra.mxu1 %v280_v21 }
  0x2d   :  { %478 = vmatprep.subr.mxu0 %v263_v22  ;;  %513 = vmatprep.subr.mxu1 %v295_v23 }
  0x2e   :  { %479 = vmatpush3.msra.mxu0 %v247_v24  ;;  %514 = vmatpush3.msra.mxu1 %v279_v25 }
  0x2f   :  { %480 = vmatprep.subr.mxu0 %v262_v26  ;;  %515 = vmatprep.subr.mxu1 %v294_v27 }
  0x30   :  { %481 = vmatpush3.msra.mxu0 %v246_v28  ;;  %516 = vmatpush3.msra.mxu1 %v278_v29 }
  0x31   :  { %482 = vmatprep.subr.mxu0 %v261_v30  ;;  %517 = vmatprep.subr.mxu1 %v293_v31 }
  0x32   :  { %483 = vmatpush3.msra.mxu0 %v245_v32  ;;  %518 = vmatpush3.msra.mxu1 %v277_v33 }
  0x33   :  { %484 = vmatprep.subr.mxu0 %v260_v34  ;;  %519 = vmatprep.subr.mxu1 %v292_v35 }
  0x34   :  { %485 = vmatpush3.msra.mxu0 %v244_v36  ;;  %520 = vmatpush3.msra.mxu1 %v276_v37 }
  0x35   :  { %486 = vmatprep.subr.mxu0 %v259_v38  ;;  %521 = vmatprep.subr.mxu1 %v291_v39 }
  0x36   :  { %487 = vmatpush3.msra.mxu0 %v243_v40  ;;  %522 = vmatpush3.msra.mxu1 %v275_v41 }
  0x37   :  { %488 = vmatprep.subr.mxu0 %v258_v42  ;;  %523 = vmatprep.subr.mxu1 %v290_v43 }
  0x38   :  { %489 = vmatpush3.msra.mxu0 %v242_v44  ;;  %524 = vmatpush3.msra.mxu1 %v274_v45 }
  0x39   :  { %490 = vmatprep.subr.mxu0 %v257_v46  ;;  %525 = vmatprep.subr.mxu1 %v289_v47 }
  0x3a   :  { %491 = vmatpush3.msra.mxu0 %v241_v48  ;;  %526 = vmatpush3.msra.mxu1 %v273_v49 }
  0xda   :  { %v161_v61 = vpop.f32.mrf.mxu0  ;;  %v232_v62 = vpop.f32.mrf.mxu1 }
  0xdb   :  { %v233_v63 = vadd.f32 %v232_v62, %v82_v57  ;;  %v162_v0 = vadd.f32 %v161_v61, %v74_v58 }
  0xdc   :  { %v163_v1 = vpop.f32.mrf.mxu0  ;;  %v234_v2 = vpop.f32.mrf.mxu1 }
  0xdd   :  { %v164_v3 = vadd.f32 %v163_v1, %v78_v59  ;;  %v235_v4 = vadd.f32 %v234_v2, %v86_v60  ;;  %v239_v5 = vmax.f32 %v233_v63, 0.0  ;;  %v237_v8 = vmax.f32 %v162_v0, 0.0 }
  0xdf   :  { %v238_v6 = vmax.f32 %v164_v3, 0.0  ;;  %v240_v7 = vmax.f32 %v235_v4, 0.0 }
  0xe1   :  { %376 = vmatprep.mubr.f32.mxu0 %v238_v6  ;;  %446 = vmatprep.mubr.f32.mxu1 %v240_v7 }
  0xe2   :  { %377 = vmatmul.mubr.f32.vlgmr.msra.gmra.mxu0 %v237_v8  ;;  %447 = vmatmul.mubr.f32.vlgmr.msra.gmra.mxu1 %v239_v5 }
 0x1a2   :  { %v492_v9 = vpop.f32.mrf.mxu0  ;;  %v527_v10 = vpop.f32.mrf.mxu1 }
 0x1a4   :  { %v493_v12 = vpop.f32.mrf.mxu0  ;;  %v528_v13 = vpop.f32.mrf.mxu1 }
 0x1a5   :  { %v494_v14 = vadd.f32 %v493_v12, %v492_v9  ;;  %v529_v16 = vadd.f32 %v528_v13, %v527_v10 }
 0x1a7   :  { %v379_v15 = vadd.f32 %v494_v14, %v459_v11 }
 0x1a9   :  { %v449_v17 = vadd.f32 %v529_v16, %v379_v15 }
 0x1ab   :  { %452 = vst [vmem:[%s915_s5] sm:$0xff] %v449_v17 }

</bundles_post_ra>
